<compile_context>
chip_gen: v7x
topology: tpu7x:2x2x1
jax: 0.10.0
libtpu: 0.0.40
codegen_flags: <defaults>
</compile_context>

<pallas_src>
import jax
import jax.numpy as jnp
from jax.experimental import pallas as pl
from jax.experimental.pallas import tpu as pltpu

LANE = 128      # lane width (last dim granularity)
SUBLANE = 8     # sublane granularity (second-to-last dim)


def _round_up(v, m):
    return ((v + m - 1) // m) * m


def ids_kernel(x_ref,
               w1_ref, b1_ref,
               w2_ref, b2_ref,
               w3_ref, b3_ref,
               w4_ref, b4_ref,
               w5_ref, b5_ref,
               o_ref):
    """One batch tile through the 5-layer MLP; weights resident in VMEM.

    Dropout (eval) and LeakyReLU(negative_slope=1.0) are identity, so each
    layer is matmul + bias. MXU inputs are bf16; accumulation and the
    bias-add epilogue stay in f32 (VPU).
    """
    def layer(h_f32, w_ref, b_ref):
        acc = jnp.dot(h_f32.astype(jnp.bfloat16), w_ref[...],
                      preferred_element_type=jnp.float32)
        return acc + b_ref[...]

    h = x_ref[...].astype(jnp.float32)
    h = layer(h, w1_ref, b1_ref)
    h = layer(h, w2_ref, b2_ref)
    h = layer(h, w3_ref, b3_ref)
    h = layer(h, w4_ref, b4_ref)
    h = layer(h, w5_ref, b5_ref)
    o_ref[...] = h.astype(o_ref.dtype)


def blackbox_ids_forward(x, params, *, block_batch=256):
    """x: [B, input_dim] float32; params: list of (W [in,out] f32, b [1,out] f32)."""
    B, d_in = x.shape
    out_dim = params[-1][0].shape[1]

    # --- pad feature dims to lane multiples, batch to a whole number of tiles ---
    d_in_p = _round_up(d_in, LANE)
    tb = min(block_batch, _round_up(B, SUBLANE))   # batch tile (multiple of 8)
    b_p = _round_up(B, tb)

    x_p = jnp.zeros((b_p, d_in_p), jnp.float32).at[:B, :d_in].set(x)

    padded_params = []
    for w, b in params:
        din, dout = w.shape
        din_p, dout_p = _round_up(din, LANE), _round_up(dout, LANE)
        w_p = jnp.zeros((din_p, dout_p), jnp.bfloat16)
        w_p = w_p.at[:din, :dout].set(w.astype(jnp.bfloat16))
        b_pd = jnp.zeros((1, dout_p), jnp.float32).at[:, :dout].set(b)
        padded_params.append((w_p, b_pd))
    out_p = padded_params[-1][0].shape[1]

    flat_inputs = [x_p]
    in_specs = [pl.BlockSpec((tb, d_in_p), lambda i: (i, 0))]
    for w_p, b_pd in padded_params:
        flat_inputs += [w_p, b_pd]
        # Same block index at every grid step -> no re-DMA; weights stay resident.
        in_specs += [pl.BlockSpec(w_p.shape, lambda i: (0, 0)),
                     pl.BlockSpec(b_pd.shape, lambda i: (0, 0))]

    out_padded = pl.pallas_call(
        ids_kernel,
        out_shape=jax.ShapeDtypeStruct((b_p, out_p), jnp.float32),
        grid_spec=pltpu.PrefetchScalarGridSpec(
            num_scalar_prefetch=0,
            grid=(b_p // tb,),
            in_specs=in_specs,
            out_specs=pl.BlockSpec((tb, out_p), lambda i: (i, 0)),
        ),
        compiler_params=pltpu.CompilerParams(
            dimension_semantics=("parallel",),          # megacore sharding on v7x
            vmem_limit_bytes=64 * 1024 * 1024,
        ),
    )(*flat_inputs)

    return out_padded[:B, :out_dim]


def init_params(key, input_dim, output_dim):
    """Deterministic synthetic parameters matching the PyTorch layer shapes."""
    dims = [
        (input_dim, input_dim * 2),
        (input_dim * 2, input_dim * 2),
        (input_dim * 2, input_dim // 2),
        (input_dim // 2, input_dim // 2),
        (input_dim // 2, output_dim),
    ]
    params = []
    for (d_in, d_out) in dims:
        key, kw, kb = jax.random.split(key, 3)
        bound = 1.0 / jnp.sqrt(d_in)   # nn.Linear default-init-like bound
        w = jax.random.uniform(kw, (d_in, d_out), jnp.float32, -bound, bound)
        b = jax.random.uniform(kb, (1, d_out), jnp.float32, -bound, bound)
        params.append((w, b))
    return params


def reference_forward_f32(x, params):
    h = x
    for w, b in params:
        h = h @ w + b   # dropout (eval) and LeakyReLU(slope=1.0) are identity
    return h


def reference_forward_bf16(x, params):
    """Mirrors kernel numerics: bf16 MXU operands, f32 accumulation + bias add."""
    h = x.astype(jnp.float32)
    for w, b in params:
        h = jnp.dot(h.astype(jnp.bfloat16), w.astype(jnp.bfloat16),
                    preferred_element_type=jnp.float32) + b
    return h


if __name__ == "__main__":
    B = 8
    INPUT_DIM = 32
    OUTPUT_DIM = 8

    key = jax.random.PRNGKey(0)
    key, kx = jax.random.split(key)
    x = jax.random.normal(kx, (B, INPUT_DIM), jnp.float32)
    params = init_params(key, INPUT_DIM, OUTPUT_DIM)

    out = blackbox_ids_forward(x, params)
    out = jax.block_until_ready(out)
    assert out.shape == (B, OUTPUT_DIM)

    # Exact-numerics check against a JAX reference with the same bf16/f32 mix.
    ref_emu = reference_forward_bf16(x, params)
    assert jnp.allclose(out, ref_emu, atol=1e-3, rtol=1e-3), "mismatch vs bf16 reference"

    # Sanity check against the pure-f32 reference (loose tol for bf16 MXU inputs).
    ref_f32 = reference_forward_f32(x, params)
    assert jnp.allclose(out, ref_f32, atol=5e-2, rtol=5e-2), "mismatch vs f32 reference"

    print("KERNEL_OK")
</pallas_src>

<mosaic_0001>
module attributes {stable_mosaic.version = 11 : i64} {
  func.func @ids_kernel(%arg0: i32, %arg1: memref<8x128xf32, #tpu.memory_space<vmem>>, %arg2: memref<128x128xbf16, #tpu.memory_space<vmem>>, %arg3: memref<1x128xf32, #tpu.memory_space<vmem>>, %arg4: memref<128x128xbf16, #tpu.memory_space<vmem>>, %arg5: memref<1x128xf32, #tpu.memory_space<vmem>>, %arg6: memref<128x128xbf16, #tpu.memory_space<vmem>>, %arg7: memref<1x128xf32, #tpu.memory_space<vmem>>, %arg8: memref<128x128xbf16, #tpu.memory_space<vmem>>, %arg9: memref<1x128xf32, #tpu.memory_space<vmem>>, %arg10: memref<128x128xbf16, #tpu.memory_space<vmem>>, %arg11: memref<1x128xf32, #tpu.memory_space<vmem>>, %arg12: memref<8x128xf32, #tpu.memory_space<vmem>>) attributes {dimension_semantics = [#tpu.dimension_semantics<parallel>], iteration_bounds = array<i64: 1>, scalar_prefetch = 0 : i64, scratch_operands = 0 : i64, tpu.core_type = #tpu.core_type<tc>, window_params = [{transform_indices = @transform_0, window_bounds = array<i64: 8, 128>}, {pipeline_mode = #tpu.pipeline_mode<synchronous>, transform_indices = @transform_1, window_bounds = array<i64: 128, 128>}, {pipeline_mode = #tpu.pipeline_mode<synchronous>, transform_indices = @transform_2, window_bounds = array<i64: 1, 128>}, {pipeline_mode = #tpu.pipeline_mode<synchronous>, transform_indices = @transform_3, window_bounds = array<i64: 128, 128>}, {pipeline_mode = #tpu.pipeline_mode<synchronous>, transform_indices = @transform_4, window_bounds = array<i64: 1, 128>}, {pipeline_mode = #tpu.pipeline_mode<synchronous>, transform_indices = @transform_5, window_bounds = array<i64: 128, 128>}, {pipeline_mode = #tpu.pipeline_mode<synchronous>, transform_indices = @transform_6, window_bounds = array<i64: 1, 128>}, {pipeline_mode = #tpu.pipeline_mode<synchronous>, transform_indices = @transform_7, window_bounds = array<i64: 128, 128>}, {pipeline_mode = #tpu.pipeline_mode<synchronous>, transform_indices = @transform_8, window_bounds = array<i64: 1, 128>}, {pipeline_mode = #tpu.pipeline_mode<synchronous>, transform_indices = @transform_9, window_bounds = array<i64: 128, 128>}, {pipeline_mode = #tpu.pipeline_mode<synchronous>, transform_indices = @transform_10, window_bounds = array<i64: 1, 128>}, {transform_indices = @transform_11, window_bounds = array<i64: 8, 128>}]} {
    %c0 = arith.constant 0 : index
    %c0_0 = arith.constant 0 : index
    %0 = vector.load %arg1[%c0, %c0_0] : memref<8x128xf32, #tpu.memory_space<vmem>>, vector<8x128xf32>
    %1 = arith.truncf %0 : vector<8x128xf32> to vector<8x128xbf16>
    %c0_1 = arith.constant 0 : index
    %c0_2 = arith.constant 0 : index
    %2 = vector.load %arg2[%c0_1, %c0_2] : memref<128x128xbf16, #tpu.memory_space<vmem>>, vector<128x128xbf16>
    %cst = arith.constant dense<0.000000e+00> : vector<8x128xf32>
    %3 = tpu.matmul %1, %2, %cst {dimension_numbers = #tpu.dot_dimension_numbers<[1], [0], [0], [1], [0, 0, 1, 1], [], []>} : vector<8x128xbf16>, vector<128x128xbf16>, vector<8x128xf32> -> vector<8x128xf32>
    %c0_3 = arith.constant 0 : index
    %c0_4 = arith.constant 0 : index
    %4 = vector.load %arg3[%c0_3, %c0_4] : memref<1x128xf32, #tpu.memory_space<vmem>>, vector<1x128xf32>
    %5 = vector.broadcast %4 : vector<1x128xf32> to vector<8x128xf32>
    %6 = arith.addf %3, %5 : vector<8x128xf32>
    %7 = arith.truncf %6 : vector<8x128xf32> to vector<8x128xbf16>
    %c0_5 = arith.constant 0 : index
    %c0_6 = arith.constant 0 : index
    %8 = vector.load %arg4[%c0_5, %c0_6] : memref<128x128xbf16, #tpu.memory_space<vmem>>, vector<128x128xbf16>
    %cst_7 = arith.constant dense<0.000000e+00> : vector<8x128xf32>
    %9 = tpu.matmul %7, %8, %cst_7 {dimension_numbers = #tpu.dot_dimension_numbers<[1], [0], [0], [1], [0, 0, 1, 1], [], []>} : vector<8x128xbf16>, vector<128x128xbf16>, vector<8x128xf32> -> vector<8x128xf32>
    %c0_8 = arith.constant 0 : index
    %c0_9 = arith.constant 0 : index
    %10 = vector.load %arg5[%c0_8, %c0_9] : memref<1x128xf32, #tpu.memory_space<vmem>>, vector<1x128xf32>
    %11 = vector.broadcast %10 : vector<1x128xf32> to vector<8x128xf32>
    %12 = arith.addf %9, %11 : vector<8x128xf32>
    %13 = arith.truncf %12 : vector<8x128xf32> to vector<8x128xbf16>
    %c0_10 = arith.constant 0 : index
    %c0_11 = arith.constant 0 : index
    %14 = vector.load %arg6[%c0_10, %c0_11] : memref<128x128xbf16, #tpu.memory_space<vmem>>, vector<128x128xbf16>
    %cst_12 = arith.constant dense<0.000000e+00> : vector<8x128xf32>
    %15 = tpu.matmul %13, %14, %cst_12 {dimension_numbers = #tpu.dot_dimension_numbers<[1], [0], [0], [1], [0, 0, 1, 1], [], []>} : vector<8x128xbf16>, vector<128x128xbf16>, vector<8x128xf32> -> vector<8x128xf32>
    %c0_13 = arith.constant 0 : index
    %c0_14 = arith.constant 0 : index
    %16 = vector.load %arg7[%c0_13, %c0_14] : memref<1x128xf32, #tpu.memory_space<vmem>>, vector<1x128xf32>
    %17 = vector.broadcast %16 : vector<1x128xf32> to vector<8x128xf32>
    %18 = arith.addf %15, %17 : vector<8x128xf32>
    %19 = arith.truncf %18 : vector<8x128xf32> to vector<8x128xbf16>
    %c0_15 = arith.constant 0 : index
    %c0_16 = arith.constant 0 : index
    %20 = vector.load %arg8[%c0_15, %c0_16] : memref<128x128xbf16, #tpu.memory_space<vmem>>, vector<128x128xbf16>
    %cst_17 = arith.constant dense<0.000000e+00> : vector<8x128xf32>
    %21 = tpu.matmul %19, %20, %cst_17 {dimension_numbers = #tpu.dot_dimension_numbers<[1], [0], [0], [1], [0, 0, 1, 1], [], []>} : vector<8x128xbf16>, vector<128x128xbf16>, vector<8x128xf32> -> vector<8x128xf32>
    %c0_18 = arith.constant 0 : index
    %c0_19 = arith.constant 0 : index
    %22 = vector.load %arg9[%c0_18, %c0_19] : memref<1x128xf32, #tpu.memory_space<vmem>>, vector<1x128xf32>
    %23 = vector.broadcast %22 : vector<1x128xf32> to vector<8x128xf32>
    %24 = arith.addf %21, %23 : vector<8x128xf32>
    %25 = arith.truncf %24 : vector<8x128xf32> to vector<8x128xbf16>
    %c0_20 = arith.constant 0 : index
    %c0_21 = arith.constant 0 : index
    %26 = vector.load %arg10[%c0_20, %c0_21] : memref<128x128xbf16, #tpu.memory_space<vmem>>, vector<128x128xbf16>
    %cst_22 = arith.constant dense<0.000000e+00> : vector<8x128xf32>
    %27 = tpu.matmul %25, %26, %cst_22 {dimension_numbers = #tpu.dot_dimension_numbers<[1], [0], [0], [1], [0, 0, 1, 1], [], []>} : vector<8x128xbf16>, vector<128x128xbf16>, vector<8x128xf32> -> vector<8x128xf32>
    %c0_23 = arith.constant 0 : index
    %c0_24 = arith.constant 0 : index
    %28 = vector.load %arg11[%c0_23, %c0_24] : memref<1x128xf32, #tpu.memory_space<vmem>>, vector<1x128xf32>
    %29 = vector.broadcast %28 : vector<1x128xf32> to vector<8x128xf32>
    %30 = arith.addf %27, %29 : vector<8x128xf32>
    %c0_25 = arith.constant 0 : index
    %c0_26 = arith.constant 0 : index
    %31 = vector.load %arg12[%c0_25, %c0_26] : memref<8x128xf32, #tpu.memory_space<vmem>>, vector<8x128xf32>
    tpu.vector_store %arg12[%c0_25, %c0_26], %30 {strides = array<i32>} : memref<8x128xf32, #tpu.memory_space<vmem>>, vector<8x128xf32>,
    return
  }
  func.func @transform_0(%arg0: i32) -> (i32, i32) {
    %c0_i32 = arith.constant 0 : i32
    %c0_i32_0 = arith.constant 0 : i32
    return %arg0, %c0_i32 : i32, i32
  }
  func.func @transform_1(%arg0: i32) -> (i32, i32) {
    %c0_i32 = arith.constant 0 : i32
    %c0_i32_0 = arith.constant 0 : i32
    %c0_i32_1 = arith.constant 0 : i32
    return %c0_i32, %c0_i32_0 : i32, i32
  }
  func.func @transform_2(%arg0: i32) -> (i32, i32) {
    %c0_i32 = arith.constant 0 : i32
    %c0_i32_0 = arith.constant 0 : i32
    %c0_i32_1 = arith.constant 0 : i32
    return %c0_i32, %c0_i32_0 : i32, i32
  }
  func.func @transform_3(%arg0: i32) -> (i32, i32) {
    %c0_i32 = arith.constant 0 : i32
    %c0_i32_0 = arith.constant 0 : i32
    %c0_i32_1 = arith.constant 0 : i32
    return %c0_i32, %c0_i32_0 : i32, i32
  }
  func.func @transform_4(%arg0: i32) -> (i32, i32) {
    %c0_i32 = arith.constant 0 : i32
    %c0_i32_0 = arith.constant 0 : i32
    %c0_i32_1 = arith.constant 0 : i32
    return %c0_i32, %c0_i32_0 : i32, i32
  }
  func.func @transform_5(%arg0: i32) -> (i32, i32) {
    %c0_i32 = arith.constant 0 : i32
    %c0_i32_0 = arith.constant 0 : i32
    %c0_i32_1 = arith.constant 0 : i32
    return %c0_i32, %c0_i32_0 : i32, i32
  }
  func.func @transform_6(%arg0: i32) -> (i32, i32) {
    %c0_i32 = arith.constant 0 : i32
    %c0_i32_0 = arith.constant 0 : i32
    %c0_i32_1 = arith.constant 0 : i32
    return %c0_i32, %c0_i32_0 : i32, i32
  }
  func.func @transform_7(%arg0: i32) -> (i32, i32) {
    %c0_i32 = arith.constant 0 : i32
    %c0_i32_0 = arith.constant 0 : i32
    %c0_i32_1 = arith.constant 0 : i32
    return %c0_i32, %c0_i32_0 : i32, i32
  }
  func.func @transform_8(%arg0: i32) -> (i32, i32) {
    %c0_i32 = arith.constant 0 : i32
    %c0_i32_0 = arith.constant 0 : i32
    %c0_i32_1 = arith.constant 0 : i32
    return %c0_i32, %c0_i32_0 : i32, i32
  }
  func.func @transform_9(%arg0: i32) -> (i32, i32) {
    %c0_i32 = arith.constant 0 : i32
    %c0_i32_0 = arith.constant 0 : i32
    %c0_i32_1 = arith.constant 0 : i32
    return %c0_i32, %c0_i32_0 : i32, i32
  }
  func.func @transform_10(%arg0: i32) -> (i32, i32) {
    %c0_i32 = arith.constant 0 : i32
    %c0_i32_0 = arith.constant 0 : i32
    %c0_i32_1 = arith.constant 0 : i32
    return %c0_i32, %c0_i32_0 : i32, i32
  }
  func.func @transform_11(%arg0: i32) -> (i32, i32) {
    %c0_i32 = arith.constant 0 : i32
    %c0_i32_0 = arith.constant 0 : i32
    return %arg0, %c0_i32 : i32, i32
  }
}

</mosaic_0001>

<bundles_post_ra>
// kernel: tpu_custom_call.1
= control target key start
LH: loop header
LB: loop body
LE: loop exit
PB: predicated region body
PF: predicated region fallthrough
CT: control target
= control target key end

     0   :  { %16 = vsyncpa [#allocation3], 0  ;;  %s1568_s0 = inlined_call_operand.hbm [shape: f32[8,128], index: 0, kind: input, shape index: {}]   ;;  %s1569_s1 = inlined_call_operand.hbm [shape: bf16[128,128], index: 1, kind: input, shape index: {}]   ;;  %s1570_s2 = inlined_call_operand.hbm [shape: f32[1,128], index: 2, kind: input, shape index: {}]   ;;  %s1571_s3 = inlined_call_operand.hbm [shape: bf16[128,128], index: 3, kind: input, shape index: {}]   ;;  %s1572_s4 = inlined_call_operand.hbm [shape: f32[1,128], index: 4, kind: input, shape index: {}]   ;;  %s1573_s5 = inlined_call_operand.hbm [shape: bf16[128,128], index: 5, kind: input, shape index: {}]   ;;  %s1574_s6 = inlined_call_operand.hbm [shape: f32[1,128], index: 6, kind: input, shape index: {}]   ;;  %s1575_s7 = inlined_call_operand.hbm [shape: bf16[128,128], index: 7, kind: input, shape index: {}]   ;;  %s1576_s8 = inlined_call_operand.hbm [shape: f32[1,128], index: 8, kind: input, shape index: {}]   ;;  %s1577_s9 = inlined_call_operand.hbm [shape: bf16[128,128], index: 9, kind: input, shape index: {}]   ;;  %s1578_s10 = inlined_call_operand.hbm [shape: f32[1,128], index: 10, kind: input, shape index: {}]   ;;  %s1579_s11 = inlined_call_operand.hbm [shape: f32[8,128], index: 11, kind: output, shape index: {}]  }
   0x1   :  { %17 = vsyncpa [#allocation6], 0 }
   0x2   :  { %18 = vsyncpa [#allocation9], 0 }
   0x3   :  { %19 = vsyncpa [#allocation12], 0 }
   0x4   :  { %20 = vsyncpa [#allocation15], 0 }
   0x5   :  { %21 = vsyncpa [#allocation18], 0 }
   0x6   :  { %22 = vsyncpa [#allocation4], 0  ;;  %s1283_s17 = smov [#allocation5]   ;;  %s1005_s21 = scalar_lea.hbm %s1569_s1, 1024 }
   0x7   :  { %s38_s18 = sshll.u32 %s1283_s17, 4  ;;  %p1006_p0 = scmp.ne.s32.totalorder %s1569_s1, %s1005_s21  ;;  %s39_s18 = int_to_ptr.vmem [resolvable:$true] %s38_s18 }
   0x8   :  { %p1009_p1 = scmp.lt.u32.totalorder %s1005_s21, %s1569_s1 }
   0xa   :  { %p1011_p2 = pnand %p1009_p1, %p1006_p0 }
   0xc   :  { %1014 = shalt.err (!%p1011_p2)
}
   0xd   :  { %s1015_s26 = scalar_lea.vmem %s39_s18, 1024  ;;  %p1020_p4 = scmp.lt.s32.totalorder %s39_s18, %s39_s18 }
   0xe   :  { %p1016_p3 = scmp.ne.s32.totalorder %s39_s18, %s1015_s26  ;;  %p1021_p5 = scmp.lt.s32.totalorder %s1015_s26, %s1015_s26 }
  0x10   :  { %p1022_p6 = por %p1021_p5, %p1020_p4 }
  0x12   :  { %p1023_p7 = pnand %p1022_p6, %p1016_p3 }
  0x14   :  { %1026 = shalt.err (!%p1023_p7)
}
  0x15   :  { %s1284_s27 = smov 64   ;;  %s1285_s28 = smov 4  }
  0x16   :  { %44 = dma.hbm_to_vmem [thread:$0]  %s1569_s1, 1024, %s39_s18, [#allocation6], %s1284_s27, %s1284_s27, %s1285_s28  }
  0x17   :  { %s1286_s12 = smov [#allocation8]   ;;  %s1287_s14 = smov [#allocation11]  }
  0x18   :  { %s60_s13 = sshll.u32 %s1286_s12, 4  ;;  %s82_s15 = sshll.u32 %s1287_s14, 4  ;;  %s61_s13 = int_to_ptr.vmem [resolvable:$true] %s60_s13  ;;  %s83_s15 = int_to_ptr.vmem [resolvable:$true] %s82_s15 }
  0x19   :  { %s1027_s19 = scalar_lea.hbm %s1571_s3, 1024 }
  0x1a   :  { %p1028_p8 = scmp.ne.s32.totalorder %s1571_s3, %s1027_s19  ;;  %p1031_p9 = scmp.lt.u32.totalorder %s1027_s19, %s1571_s3 }
  0x1c   :  { %p1033_p10 = pnand %p1031_p9, %p1028_p8 }
  0x1e   :  { %1036 = shalt.err (!%p1033_p10)
}
  0x1f   :  { %s1037_s1 = scalar_lea.vmem %s61_s13, 1024  ;;  %p1042_p12 = scmp.lt.s32.totalorder %s61_s13, %s61_s13 }
  0x20   :  { %p1038_p11 = scmp.ne.s32.totalorder %s61_s13, %s1037_s1  ;;  %p1043_p13 = scmp.lt.s32.totalorder %s1037_s1, %s1037_s1 }
  0x22   :  { %p1044_p0 = por %p1043_p13, %p1042_p12 }
  0x24   :  { %p1045_p1 = pnand %p1044_p0, %p1038_p11 }
  0x26   :  { %1048 = shalt.err (!%p1045_p1)
}
  0x27   :  { %66 = dma.hbm_to_vmem [thread:$0]  %s1571_s3, 1024, %s61_s13, [#allocation9], %s1284_s27, %s1284_s27, %s1285_s28  }
  0x28   :  { %s1049_s29 = scalar_lea.hbm %s1573_s5, 1024 }
  0x29   :  { %p1050_p2 = scmp.ne.s32.totalorder %s1573_s5, %s1049_s29  ;;  %p1053_p3 = scmp.lt.u32.totalorder %s1049_s29, %s1573_s5 }
  0x2b   :  { %p1055_p4 = pnand %p1053_p3, %p1050_p2 }
  0x2d   :  { %1058 = shalt.err (!%p1055_p4)
}
  0x2e   :  { %s1059_s17 = scalar_lea.vmem %s83_s15, 1024  ;;  %p1064_p6 = scmp.lt.s32.totalorder %s83_s15, %s83_s15 }
  0x2f   :  { %p1060_p5 = scmp.ne.s32.totalorder %s83_s15, %s1059_s17  ;;  %p1065_p7 = scmp.lt.s32.totalorder %s1059_s17, %s1059_s17 }
  0x31   :  { %p1066_p8 = por %p1065_p7, %p1064_p6 }
  0x33   :  { %p1067_p9 = pnand %p1066_p8, %p1060_p5 }
  0x35   :  { %1070 = shalt.err (!%p1067_p9)
}
  0x36   :  { %88 = dma.hbm_to_vmem [thread:$0]  %s1573_s5, 1024, %s83_s15, [#allocation12], %s1284_s27, %s1284_s27, %s1285_s28  }
  0x37   :  { %s1288_s19 = smov [#allocation14]   ;;  %s1289_s21 = smov [#allocation17]  }
  0x38   :  { %s104_s20 = sshll.u32 %s1288_s19, 4  ;;  %s126_s22 = sshll.u32 %s1289_s21, 4  ;;  %s105_s20 = int_to_ptr.vmem [resolvable:$true] %s104_s20  ;;  %s127_s22 = int_to_ptr.vmem [resolvable:$true] %s126_s22 }
  0x39   :  { %s1071_s18 = scalar_lea.hbm %s1575_s7, 1024 }
  0x3a   :  { %p1072_p10 = scmp.ne.s32.totalorder %s1575_s7, %s1071_s18  ;;  %p1075_p11 = scmp.lt.u32.totalorder %s1071_s18, %s1575_s7 }
  0x3c   :  { %p1077_p12 = pnand %p1075_p11, %p1072_p10 }
  0x3e   :  { %1080 = shalt.err (!%p1077_p12)
}
  0x3f   :  { %s1081_s5 = scalar_lea.vmem %s105_s20, 1024  ;;  %p1086_p0 = scmp.lt.s32.totalorder %s105_s20, %s105_s20 }
  0x40   :  { %p1082_p13 = scmp.ne.s32.totalorder %s105_s20, %s1081_s5  ;;  %p1087_p1 = scmp.lt.s32.totalorder %s1081_s5, %s1081_s5 }
  0x42   :  { %p1088_p2 = por %p1087_p1, %p1086_p0 }
  0x44   :  { %p1089_p3 = pnand %p1088_p2, %p1082_p13 }
  0x46   :  { %1092 = shalt.err (!%p1089_p3)
}
  0x47   :  { %110 = dma.hbm_to_vmem [thread:$0]  %s1575_s7, 1024, %s105_s20, [#allocation15], %s1284_s27, %s1284_s27, %s1285_s28  }
  0x48   :  { %s1093_s16 = scalar_lea.hbm %s1577_s9, 1024 }
  0x49   :  { %p1094_p4 = scmp.ne.s32.totalorder %s1577_s9, %s1093_s16  ;;  %p1097_p5 = scmp.lt.u32.totalorder %s1093_s16, %s1577_s9 }
  0x4b   :  { %p1099_p6 = pnand %p1097_p5, %p1094_p4 }
  0x4d   :  { %1102 = shalt.err (!%p1099_p6)
}
  0x4e   :  { %s1103_s21 = scalar_lea.vmem %s127_s22, 1024  ;;  %p1108_p8 = scmp.lt.s32.totalorder %s127_s22, %s127_s22 }
  0x4f   :  { %p1104_p7 = scmp.ne.s32.totalorder %s127_s22, %s1103_s21  ;;  %p1109_p9 = scmp.lt.s32.totalorder %s1103_s21, %s1103_s21 }
  0x51   :  { %p1110_p10 = por %p1109_p9, %p1108_p8 }
  0x53   :  { %p1111_p11 = pnand %p1110_p10, %p1104_p7 }
  0x55   :  { %1114 = shalt.err (!%p1111_p11)
}
  0x56   :  { %132 = dma.hbm_to_vmem [thread:$0]  %s1577_s9, 1024, %s127_s22, [#allocation18], %s1284_s27, %s1284_s27, %s1285_s28  }
  0x57   :  { %s1290_s23 = smov [#allocation2]   ;;  %s1291_s18 = smov [#allocation7]  }
  0x58   :  { %s29_s1 = sshll.u32 %s1290_s23, 4  ;;  %s51_s24 = sshll.u32 %s1291_s18, 4  ;;  %s30_s1 = int_to_ptr.vmem [resolvable:$true] %s29_s1  ;;  %s52_s24 = int_to_ptr.vmem [resolvable:$true] %s51_s24 }
  0x59   :  { %s1115_s29 = scalar_lea.hbm %s1568_s0, 128 }
  0x5a   :  { %p1116_p12 = scmp.ne.s32.totalorder %s1568_s0, %s1115_s29  ;;  %p1119_p13 = scmp.lt.u32.totalorder %s1115_s29, %s1568_s0 }
  0x5c   :  { %p1121_p0 = pnand %p1119_p13, %p1116_p12 }
  0x5e   :  { %1124 = shalt.err (!%p1121_p0)
}
  0x5f   :  { %s1125_s9 = scalar_lea.vmem %s30_s1, 128  ;;  %p1130_p2 = scmp.lt.s32.totalorder %s30_s1, %s30_s1 }
  0x60   :  { %p1126_p1 = scmp.ne.s32.totalorder %s30_s1, %s1125_s9  ;;  %p1131_p3 = scmp.lt.s32.totalorder %s1125_s9, %s1125_s9 }
  0x62   :  { %p1132_p4 = por %p1131_p3, %p1130_p2 }
  0x64   :  { %p1133_p5 = pnand %p1132_p4, %p1126_p1 }
  0x66   :  { %1136 = shalt.err (!%p1133_p5)
}
  0x67   :  { %32 = dma.hbm_to_vmem [thread:$0]  %s1568_s0, 128, %s30_s1, [#allocation3]  }
  0x68   :  { %s1137_s16 = scalar_lea.hbm %s1570_s2, 16 }
  0x69   :  { %p1138_p6 = scmp.ne.s32.totalorder %s1570_s2, %s1137_s16  ;;  %p1141_p7 = scmp.lt.u32.totalorder %s1137_s16, %s1570_s2 }
  0x6b   :  { %p1143_p8 = pnand %p1141_p7, %p1138_p6 }
  0x6d   :  { %1146 = shalt.err (!%p1143_p8)
}
  0x6e   :  { %s1147_s21 = scalar_lea.vmem %s52_s24, 16  ;;  %s1151_s7 = scalar_lea.vmem %s52_s24, 32 }
  0x6f   :  { %p1148_p9 = scmp.ne.s32.totalorder %s52_s24, %s1147_s21  ;;  %p1152_p10 = scmp.lt.s32.totalorder %s52_s24, %s52_s24 }
  0x70   :  { %p1153_p11 = scmp.lt.s32.totalorder %s1151_s7, %s1147_s21 }
  0x72   :  { %p1154_p12 = por %p1153_p11, %p1152_p10 }
  0x74   :  { %p1155_p13 = pnand %p1154_p12, %p1148_p9 }
  0x76   :  { %1158 = shalt.err (!%p1155_p13)
}
  0x77   :  { %54 = dma.hbm_to_vmem [thread:$0]  %s1570_s2, 16, %s52_s24, [#allocation6]  }
  0x78   :  { %s1292_s23 = smov [#allocation10]   ;;  %s1293_s18 = smov [#allocation13]  }
  0x79   :  { %s73_s1 = sshll.u32 %s1292_s23, 4  ;;  %s95_s25 = sshll.u32 %s1293_s18, 4  ;;  %s74_s1 = int_to_ptr.vmem [resolvable:$true] %s73_s1  ;;  %s96_s25 = int_to_ptr.vmem [resolvable:$true] %s95_s25 }
  0x7a   :  { %s1159_s5 = scalar_lea.hbm %s1572_s4, 16 }
  0x7b   :  { %p1160_p0 = scmp.ne.s32.totalorder %s1572_s4, %s1159_s5  ;;  %p1163_p1 = scmp.lt.u32.totalorder %s1159_s5, %s1572_s4 }
  0x7d   :  { %p1165_p2 = pnand %p1163_p1, %p1160_p0 }
  0x7f   :  { %1168 = shalt.err (!%p1165_p2)
}
  0x80   :  { %s1169_s2 = scalar_lea.vmem %s74_s1, 16  ;;  %s1173_s24 = scalar_lea.vmem %s74_s1, 32 }
  0x81   :  { %p1170_p3 = scmp.ne.s32.totalorder %s74_s1, %s1169_s2  ;;  %p1174_p4 = scmp.lt.s32.totalorder %s74_s1, %s74_s1 }
  0x82   :  { %p1175_p5 = scmp.lt.s32.totalorder %s1173_s24, %s1169_s2 }
  0x84   :  { %p1176_p6 = por %p1175_p5, %p1174_p4 }
  0x86   :  { %p1177_p7 = pnand %p1176_p6, %p1170_p3 }
  0x88   :  { %1180 = shalt.err (!%p1177_p7)
}
  0x89   :  { %76 = dma.hbm_to_vmem [thread:$0]  %s1572_s4, 16, %s74_s1, [#allocation9]  }
  0x8a   :  { %s1181_s16 = scalar_lea.hbm %s1574_s6, 16 }
  0x8b   :  { %p1182_p8 = scmp.ne.s32.totalorder %s1574_s6, %s1181_s16  ;;  %p1185_p9 = scmp.lt.u32.totalorder %s1181_s16, %s1574_s6 }
  0x8d   :  { %p1187_p10 = pnand %p1185_p9, %p1182_p8 }
  0x8f   :  { %1190 = shalt.err (!%p1187_p10)
}
  0x90   :  { %s1191_s21 = scalar_lea.vmem %s96_s25, 16  ;;  %s1195_s7 = scalar_lea.vmem %s96_s25, 32 }
  0x91   :  { %p1192_p11 = scmp.ne.s32.totalorder %s96_s25, %s1191_s21  ;;  %p1196_p12 = scmp.lt.s32.totalorder %s96_s25, %s96_s25 }
  0x92   :  { %p1197_p13 = scmp.lt.s32.totalorder %s1195_s7, %s1191_s21 }
  0x94   :  { %p1198_p0 = por %p1197_p13, %p1196_p12 }
  0x96   :  { %p1199_p1 = pnand %p1198_p0, %p1192_p11 }
  0x98   :  { %1202 = shalt.err (!%p1199_p1)
}
  0x99   :  { %98 = dma.hbm_to_vmem [thread:$0]  %s1574_s6, 16, %s96_s25, [#allocation12]  }
  0x9a   :  { %s1294_s20 = smov [#allocation16]   ;;  %s1295_s1 = smov [#allocation19]  }
  0x9b   :  { %s117_s23 = sshll.u32 %s1294_s20, 4  ;;  %s139_s18 = sshll.u32 %s1295_s1, 4  ;;  %s118_s23 = int_to_ptr.vmem [resolvable:$true] %s117_s23  ;;  %s140_s18 = int_to_ptr.vmem [resolvable:$true] %s139_s18 }
  0x9c   :  { %s1203_s5 = scalar_lea.hbm %s1576_s8, 16 }
  0x9d   :  { %p1204_p2 = scmp.ne.s32.totalorder %s1576_s8, %s1203_s5  ;;  %p1207_p3 = scmp.lt.u32.totalorder %s1203_s5, %s1576_s8 }
  0x9f   :  { %p1209_p4 = pnand %p1207_p3, %p1204_p2 }
  0xa1   :  { %1212 = shalt.err (!%p1209_p4)
}
  0xa2   :  { %s1213_s6 = scalar_lea.vmem %s118_s23, 16  ;;  %s1217_s25 = scalar_lea.vmem %s118_s23, 32 }
  0xa3   :  { %p1214_p5 = scmp.ne.s32.totalorder %s118_s23, %s1213_s6  ;;  %p1218_p6 = scmp.lt.s32.totalorder %s118_s23, %s118_s23 }
  0xa4   :  { %p1219_p7 = scmp.lt.s32.totalorder %s1217_s25, %s1213_s6 }
  0xa6   :  { %p1220_p8 = por %p1219_p7, %p1218_p6 }
  0xa8   :  { %p1221_p9 = pnand %p1220_p8, %p1214_p5 }
  0xaa   :  { %1224 = shalt.err (!%p1221_p9)
}
  0xab   :  { %120 = dma.hbm_to_vmem [thread:$0]  %s1576_s8, 16, %s118_s23, [#allocation15]  }
  0xac   :  { %s1225_s22 = scalar_lea.hbm %s1578_s10, 16 }
  0xad   :  { %p1226_p10 = scmp.ne.s32.totalorder %s1578_s10, %s1225_s22  ;;  %p1229_p11 = scmp.lt.u32.totalorder %s1225_s22, %s1578_s10 }
  0xaf   :  { %p1231_p12 = pnand %p1229_p11, %p1226_p10 }
  0xb1   :  { %1234 = shalt.err (!%p1231_p12)
}
  0xb2   :  { %s1235_s13 = scalar_lea.vmem %s140_s18, 16  ;;  %s1239_s19 = scalar_lea.vmem %s140_s18, 32 }
  0xb3   :  { %p1236_p13 = scmp.ne.s32.totalorder %s140_s18, %s1235_s13  ;;  %p1240_p0 = scmp.lt.s32.totalorder %s140_s18, %s140_s18 }
  0xb4   :  { %p1241_p1 = scmp.lt.s32.totalorder %s1239_s19, %s1235_s13 }
  0xb6   :  { %p1242_p2 = por %p1241_p1, %p1240_p0 }
  0xb8   :  { %p1243_p3 = pnand %p1242_p2, %p1236_p13 }
  0xba   :  { %1246 = shalt.err (!%p1243_p3)
}
  0xbb   :  { %142 = dma.hbm_to_vmem [thread:$0]  %s1578_s10, 16, %s140_s18, [#allocation18]  }
  0xbc   :  { %1269 = dma.done.wait [#allocation3], 128  }
  0xbd   :  { %1270 = vsyncadd [#allocation3], 4294967168 }
  0xbe   :  { %1271 = dma.done.wait [#allocation6], 1040  }
  0xbf   :  { %1272 = vsyncadd [#allocation6], 4294966256 }
  0xc0   :  { %1273 = dma.done.wait [#allocation9], 1040  }
  0xc1   :  { %1274 = vsyncadd [#allocation9], 4294966256 }
  0xc2   :  { %1275 = dma.done.wait [#allocation12], 1040  }
  0xc3   :  { %1276 = vsyncadd [#allocation12], 4294966256 }
  0xc4   :  { %1277 = dma.done.wait [#allocation15], 1040  }
  0xc5   :  { %1278 = vsyncadd [#allocation15], 4294966256 }
  0xc6   :  { %1279 = dma.done.wait [#allocation18], 1040  }
  0xc7   :  { %1280 = vsyncadd [#allocation18], 4294966256  ;;  %v1296_v0 = vmov 0.0   ;;  %vm1297_vm0 = vmmov 0   ;;  %v965_v1 = vld [vmem:[#allocation5] sm:$0xff]   ;;  %v966_v2 = vld [vmem:[#allocation5 + $0x8] sm:$0xff]  }
  0xc8   :  { %849 = vmatprep.subr.bf16.mxu0 %v1296_v0  ;;  %865 = vmatprep.mubr.msk.bf16.mxu0 %vm1297_vm0, %v1296_v0  ;;  %v967_v3 = vld [vmem:[#allocation5 + $0x10] sm:$0xff]   ;;  %v973_v4 = vld [vmem:[#allocation8] sm:$0xff]   ;;  %v968_v5 = vld [vmem:[#allocation5 + $0x18] sm:$0xff]   ;;  %s1298_s10 = smov [#allocation20]  }
  0xc9   :  { %869 = vmatprep.subr.bf16.mxu1 %v1296_v0  ;;  %885 = vmatprep.mubr.msk.bf16.mxu1 %vm1297_vm0, %v1296_v0  ;;  %v974_v6 = vld [vmem:[#allocation8 + $0x8] sm:$0xff]   ;;  %v969_v7 = vld [vmem:[#allocation5 + $0x20] sm:$0xff]   ;;  %v975_v8 = vld [vmem:[#allocation8 + $0x10] sm:$0xff]   ;;  %s745_s7 = sshll.u32 %s1298_s10, 4  ;;  %s746_s7 = int_to_ptr.vmem [resolvable:$true] %s745_s7 }
  0xca   :  { %850 = vmatpush3.bf16.msra.mxu0 %v965_v1  ;;  %870 = vmatpush3.bf16.msra.mxu1 %v973_v4  ;;  %v970_v9 = vld [vmem:[#allocation5 + $0x28] sm:$0xff]   ;;  %v976_v10 = vld [vmem:[#allocation8 + $0x18] sm:$0xff]   ;;  %v971_v11 = vld [vmem:[#allocation5 + $0x30] sm:$0xff]   ;;  %s1247_s4 = scalar_lea.vmem %s746_s7, 128  ;;  %p1252_p5 = scmp.lt.s32.totalorder %s746_s7, %s746_s7 }
  0xcb   :  { %851 = vmatprep.subr.bf16.mxu0 %v1296_v0  ;;  %871 = vmatprep.subr.bf16.mxu1 %v1296_v0  ;;  %v977_v12 = vld [vmem:[#allocation8 + $0x20] sm:$0xff]   ;;  %v972_v13 = vld [vmem:[#allocation5 + $0x38] sm:$0xff]   ;;  %v978_v15 = vld [vmem:[#allocation8 + $0x28] sm:$0xff]   ;;  %p1248_p4 = scmp.ne.s32.totalorder %s746_s7, %s1247_s4  ;;  %p1253_p6 = scmp.lt.s32.totalorder %s1247_s4, %s1247_s4 }
  0xcc   :  { %v177_v14 = vld [vmem:[#allocation2] sm:$0xff]  ;;  %v981_v19 = vld [vmem:[#allocation11] sm:$0xff]   ;;  %v982_v20 = vld [vmem:[#allocation11 + $0x8] sm:$0xff]  }
  0xcd   :  { %v178_v16 = vpack.c.bf16 %v177_v14, %v177_v14  ;;  %v979_v17 = vld [vmem:[#allocation8 + $0x30] sm:$0xff]   ;;  %v980_v18 = vld [vmem:[#allocation8 + $0x38] sm:$0xff]   ;;  %v985_v23 = vld [vmem:[#allocation11 + $0x20] sm:$0xff]   ;;  %p1254_p7 = por %p1253_p6, %p1252_p5 }
  0xce   :  { %852 = vmatpush3.bf16.msra.mxu0 %v966_v2  ;;  %872 = vmatpush3.bf16.msra.mxu1 %v974_v6  ;;  %v983_v21 = vld [vmem:[#allocation11 + $0x10] sm:$0xff]   ;;  %v984_v22 = vld [vmem:[#allocation11 + $0x18] sm:$0xff]   ;;  %v986_v24 = vld [vmem:[#allocation11 + $0x28] sm:$0xff]  }
  0xcf   :  { %853 = vmatprep.subr.bf16.mxu0 %v1296_v0  ;;  %873 = vmatprep.subr.bf16.mxu1 %v1296_v0  ;;  %v987_v25 = vld [vmem:[#allocation11 + $0x30] sm:$0xff]   ;;  %v759_v26 = vld [vmem:[#allocation7] ss:$0 sm:$0xff]  ;;  %v989_v34 = vld [vmem:[#allocation14] sm:$0xff]   ;;  %p1255_p8 = pnand %p1254_p7, %p1248_p4 }
  0xd0   :  { %v988_v33 = vld [vmem:[#allocation11 + $0x38] sm:$0xff]   ;;  %v990_v35 = vld [vmem:[#allocation14 + $0x8] sm:$0xff]   ;;  %v993_v38 = vld [vmem:[#allocation14 + $0x20] sm:$0xff]  }
  0xd1   :  { %v991_v36 = vld [vmem:[#allocation14 + $0x10] sm:$0xff]   ;;  %v992_v37 = vld [vmem:[#allocation14 + $0x18] sm:$0xff]   ;;  %v994_v39 = vld [vmem:[#allocation14 + $0x28] sm:$0xff]  }
  0xd2   :  { %854 = vmatpush3.bf16.msra.mxu0 %v967_v3  ;;  %874 = vmatpush3.bf16.msra.mxu1 %v975_v8  ;;  %v995_v40 = vld [vmem:[#allocation14 + $0x30] sm:$0xff]   ;;  %v768_v41 = vld [vmem:[#allocation10] ss:$0 sm:$0xff]  ;;  %v997_v49 = vld [vmem:[#allocation17] sm:$0xff]  }
  0xd3   :  { %855 = vmatprep.subr.bf16.mxu0 %v1296_v0  ;;  %875 = vmatprep.subr.bf16.mxu1 %v1296_v0  ;;  %v996_v48 = vld [vmem:[#allocation14 + $0x38] sm:$0xff]   ;;  %v998_v50 = vld [vmem:[#allocation17 + $0x8] sm:$0xff]   ;;  %v1001_v53 = vld [vmem:[#allocation17 + $0x20] sm:$0xff]  }
  0xd4   :  { %v999_v51 = vld [vmem:[#allocation17 + $0x10] sm:$0xff]   ;;  %v1000_v52 = vld [vmem:[#allocation17 + $0x18] sm:$0xff]   ;;  %v1002_v54 = vld [vmem:[#allocation17 + $0x28] sm:$0xff]  }
  0xd5   :  { %v1003_v55 = vld [vmem:[#allocation17 + $0x30] sm:$0xff]   ;;  %v777_v56 = vld [vmem:[#allocation13] ss:$0 sm:$0xff]  ;;  %v786_v1 = vld [vmem:[#allocation16] ss:$0 sm:$0xff] }
  0xd6   :  { %856 = vmatpush3.bf16.msra.mxu0 %v968_v5  ;;  %876 = vmatpush3.bf16.msra.mxu1 %v976_v10  ;;  %v1004_v63 = vld [vmem:[#allocation17 + $0x38] sm:$0xff]   ;;  %v795_v8 = vld [vmem:[#allocation19] ss:$0 sm:$0xff] }
  0xd7   :  { %857 = vmatprep.subr.bf16.mxu0 %v1296_v0  ;;  %877 = vmatprep.subr.bf16.mxu1 %v1296_v0 }
  0xda   :  { %858 = vmatpush3.bf16.msra.mxu0 %v969_v7  ;;  %878 = vmatpush3.bf16.msra.mxu1 %v977_v12 }
  0xdb   :  { %859 = vmatprep.subr.bf16.mxu0 %v1296_v0  ;;  %879 = vmatprep.subr.bf16.mxu1 %v1296_v0 }
  0xde   :  { %860 = vmatpush3.bf16.msra.mxu0 %v970_v9  ;;  %880 = vmatpush3.bf16.msra.mxu1 %v978_v15 }
  0xdf   :  { %861 = vmatprep.subr.bf16.mxu0 %v1296_v0  ;;  %881 = vmatprep.subr.bf16.mxu1 %v1296_v0 }
  0xe2   :  { %862 = vmatpush3.bf16.msra.mxu0 %v971_v11  ;;  %882 = vmatpush3.bf16.msra.mxu1 %v979_v17 }
  0xe3   :  { %863 = vmatprep.subr.bf16.mxu0 %v1296_v0  ;;  %883 = vmatprep.subr.bf16.mxu1 %v1296_v0 }
  0xe6   :  { %864 = vmatpush3.bf16.msra.mxu0 %v972_v13  ;;  %884 = vmatpush3.bf16.msra.mxu1 %v980_v18 }
  0xe7   :  { %889 = vmatprep.subr.bf16.mxu0 %v1296_v0  ;;  %909 = vmatprep.subr.bf16.mxu1 %v1296_v0 }
  0xe9   :  { %866 = vmatmul.mubr.bf16.vlgmr.msra.gmra.mrb[0].mxu0 %v178_v16 }
  0xea   :  { %905 = vmatprep.mubr.msk.bf16.mxu0 %vm1297_vm0, %v1296_v0  ;;  %890 = vmatpush3.bf16.msra.mxu0 %v981_v19 }
  0xeb   :  { %891 = vmatprep.subr.bf16.mxu0 %v1296_v0 }
  0xee   :  { %892 = vmatpush3.bf16.msra.mxu0 %v982_v20 }
  0xef   :  { %893 = vmatprep.subr.bf16.mxu0 %v1296_v0 }
  0xf2   :  { %894 = vmatpush3.bf16.msra.mxu0 %v983_v21 }
  0xf3   :  { %895 = vmatprep.subr.bf16.mxu0 %v1296_v0 }
  0xf6   :  { %896 = vmatpush3.bf16.msra.mxu0 %v984_v22 }
  0xf7   :  { %897 = vmatprep.subr.bf16.mxu0 %v1296_v0 }
  0xfa   :  { %898 = vmatpush3.bf16.msra.mxu0 %v985_v23 }
  0xfb   :  { %899 = vmatprep.subr.bf16.mxu0 %v1296_v0 }
  0xfe   :  { %900 = vmatpush3.bf16.msra.mxu0 %v986_v24 }
  0xff   :  { %901 = vmatprep.subr.bf16.mxu0 %v1296_v0 }
 0x102   :  { %902 = vmatpush3.bf16.msra.mxu0 %v987_v25 }
 0x103   :  { %903 = vmatprep.subr.bf16.mxu0 %v1296_v0 }
 0x106   :  { %904 = vmatpush3.bf16.msra.mxu0 %v988_v33 }
 0x107   :  { %929 = vmatprep.subr.bf16.mxu0 %v1296_v0 }
 0x1bc   :  { %v284_v27 = vpop.f32.mrb[0].mxu0 }
 0x1bd   :  { %v285_v28 = vadd.f32 %v759_v26, %v284_v27  ;;  %v867_v29 = vpop.f32.mrb[1].mxu0 }
 0x1be   :  { %v287_v30 = vpop.f32.mrb[2].mxu0 }
 0x1bf   :  { %v290_v31 = vpack.c.bf16 %v285_v28, %v285_v28  ;;  %v868_v32 = vpop.f32.mrb[3].mxu0 }
 0x1c1   :  { %886 = vmatmul.mubr.bf16.vlgmr.msra.gmra.mrb[0].mxu1 %v290_v31 }
 0x1c2   :  { %925 = vmatprep.mubr.msk.bf16.mxu1 %vm1297_vm0, %v1296_v0  ;;  %910 = vmatpush3.bf16.msra.mxu1 %v989_v34 }
 0x1c3   :  { %911 = vmatprep.subr.bf16.mxu1 %v1296_v0 }
 0x1c6   :  { %912 = vmatpush3.bf16.msra.mxu1 %v990_v35 }
 0x1c7   :  { %913 = vmatprep.subr.bf16.mxu1 %v1296_v0 }
 0x1ca   :  { %914 = vmatpush3.bf16.msra.mxu1 %v991_v36 }
 0x1cb   :  { %915 = vmatprep.subr.bf16.mxu1 %v1296_v0 }
 0x1ce   :  { %916 = vmatpush3.bf16.msra.mxu1 %v992_v37 }
 0x1cf   :  { %917 = vmatprep.subr.bf16.mxu1 %v1296_v0 }
 0x1d2   :  { %918 = vmatpush3.bf16.msra.mxu1 %v993_v38 }
 0x1d3   :  { %919 = vmatprep.subr.bf16.mxu1 %v1296_v0 }
 0x1d6   :  { %920 = vmatpush3.bf16.msra.mxu1 %v994_v39 }
 0x1d7   :  { %921 = vmatprep.subr.bf16.mxu1 %v1296_v0 }
 0x1da   :  { %922 = vmatpush3.bf16.msra.mxu1 %v995_v40 }
 0x1db   :  { %923 = vmatprep.subr.bf16.mxu1 %v1296_v0 }
 0x1de   :  { %924 = vmatpush3.bf16.msra.mxu1 %v996_v48 }
 0x294   :  { %v396_v42 = vpop.f32.mrb[0].mxu1 }
 0x295   :  { %v397_v43 = vadd.f32 %v768_v41, %v396_v42  ;;  %v887_v44 = vpop.f32.mrb[1].mxu1 }
 0x296   :  { %v399_v45 = vpop.f32.mrb[2].mxu1 }
 0x297   :  { %v402_v46 = vpack.c.bf16 %v397_v43, %v397_v43  ;;  %v888_v47 = vpop.f32.mrb[3].mxu1 }
 0x299   :  { %906 = vmatmul.mubr.bf16.vlgmr.msra.gmra.mrb[4].mxu0 %v402_v46 }
 0x29a   :  { %945 = vmatprep.mubr.msk.bf16.mxu0 %vm1297_vm0, %v1296_v0  ;;  %930 = vmatpush3.bf16.msra.mxu0 %v997_v49 }
 0x29b   :  { %931 = vmatprep.subr.bf16.mxu0 %v1296_v0 }
 0x29e   :  { %932 = vmatpush3.bf16.msra.mxu0 %v998_v50 }
 0x29f   :  { %933 = vmatprep.subr.bf16.mxu0 %v1296_v0 }
 0x2a2   :  { %934 = vmatpush3.bf16.msra.mxu0 %v999_v51 }
 0x2a3   :  { %935 = vmatprep.subr.bf16.mxu0 %v1296_v0 }
 0x2a6   :  { %936 = vmatpush3.bf16.msra.mxu0 %v1000_v52 }
 0x2a7   :  { %937 = vmatprep.subr.bf16.mxu0 %v1296_v0 }
 0x2aa   :  { %938 = vmatpush3.bf16.msra.mxu0 %v1001_v53 }
 0x2ab   :  { %939 = vmatprep.subr.bf16.mxu0 %v1296_v0 }
 0x2ae   :  { %940 = vmatpush3.bf16.msra.mxu0 %v1002_v54 }
 0x2af   :  { %941 = vmatprep.subr.bf16.mxu0 %v1296_v0 }
 0x2b2   :  { %942 = vmatpush3.bf16.msra.mxu0 %v1003_v55 }
 0x2b3   :  { %943 = vmatprep.subr.bf16.mxu0 %v1296_v0 }
 0x2b6   :  { %944 = vmatpush3.bf16.msra.mxu0 %v1004_v63 }
 0x36c   :  { %v508_v57 = vpop.f32.mrb[4].mxu0 }
 0x36d   :  { %v509_v58 = vadd.f32 %v777_v56, %v508_v57  ;;  %v907_v59 = vpop.f32.mrb[5].mxu0 }
 0x36e   :  { %v511_v60 = vpop.f32.mrb[6].mxu0 }
 0x36f   :  { %v514_v61 = vpack.c.bf16 %v509_v58, %v509_v58  ;;  %v908_v62 = vpop.f32.mrb[7].mxu0 }
 0x371   :  { %926 = vmatmul.mubr.bf16.vlgmr.msra.gmra.mrb[4].mxu1 %v514_v61 }
 0x444   :  { %v620_v2 = vpop.f32.mrb[4].mxu1 }
 0x445   :  { %v621_v3 = vadd.f32 %v786_v1, %v620_v2  ;;  %v927_v4 = vpop.f32.mrb[5].mxu1 }
 0x446   :  { %v623_v5 = vpop.f32.mrb[6].mxu1 }
 0x447   :  { %v626_v6 = vpack.c.bf16 %v621_v3, %v621_v3  ;;  %v928_v7 = vpop.f32.mrb[7].mxu1 }
 0x449   :  { %946 = vmatmul.mubr.bf16.vlgmr.msra.gmra.mrb[8].mxu0 %v626_v6 }
 0x51c   :  { %v732_v0 = vpop.f32.mrb[8].mxu0 }
 0x51d   :  { %v733_v9 = vadd.f32 %v795_v8, %v732_v0  ;;  %v947_v10 = vpop.f32.mrb[9].mxu0 }
 0x51e   :  { %v735_v11 = vpop.f32.mrb[10].mxu0 }
 0x51f   :  { %738 = vst [vmem:[#allocation20] sm:$0xff] %v733_v9  ;;  %v948_v12 = vpop.f32.mrb[11].mxu0 }
 0x520   :  { %1258 = shalt.err (!%p1255_p8)
}
 0x521   :  { %s1259_s23 = scalar_lea.hbm %s1579_s11, 128 }
 0x522   :  { %p1260_p9 = scmp.ne.s32.totalorder %s1579_s11, %s1259_s23  ;;  %p1263_p10 = scmp.lt.u32.totalorder %s1259_s23, %s1579_s11 }
 0x524   :  { %p1265_p11 = pnand %p1263_p10, %p1260_p9 }
 0x526   :  { %1268 = shalt.err (!%p1265_p11)
}
 0x527   :  { %748 = dma.vmem_to_hbm [thread:$0]  %s746_s7, 128, %s1579_s11, [#allocation4]  }
 0x528   :  { %1281 = dma.done.wait [#allocation4], 128  }
 0x529   :  { %1282 = vsyncadd [#allocation4], 4294967168 }
 0x52a   :  { %752 = vsyncpa [#allocation3], 1 }
 0x52b   :  { %753 = vsyncpa [#allocation6], 1 }
 0x52c   :  { %754 = vsyncpa [#allocation9], 1 }
 0x52d   :  { %755 = vsyncpa [#allocation12], 1 }
 0x52e   :  { %756 = vsyncpa [#allocation15], 1 }
 0x52f   :  { %757 = vsyncpa [#allocation18], 1 }
 0x530   :  { %758 = vsyncpa [#allocation4], 1 }

</bundles_post_ra>
